<compile_context>
chip_gen: v7x
topology: tpu7x:2x2x1
jax: 0.10.0
libtpu: 0.0.40
codegen_flags: <defaults>
</compile_context>

<pallas_src>
import math
import jax
import jax.numpy as jnp
from jax.experimental import pallas as pl
from jax.experimental.pallas import tpu as pltpu

INPUT_DIM = 39 + 4          # 43 real input features
IN_PAD = 128                # zero-padded K for the first matmul
HIDDEN = [256, 256, 256]
OUT_DIM = 1                 # logical output width (squeezed in the wrapper)
OUT_PAD = 128               # lane-dense padded output width
NEG_SLOPE = 0.01            # F.leaky_relu default slope


def _leaky_relu(x):
    return jnp.where(x > 0, x, NEG_SLOPE * x)


def mlp_kernel(x_ref,
               w0_ref, b0_ref,
               w1_ref, b1_ref,
               w2_ref, b2_ref,
               w3_ref, b3_ref,
               o_ref):
    # bf16 MXU inputs, f32 accumulation throughout.
    h = x_ref[...].astype(jnp.bfloat16)

    h = b0_ref[...] + jnp.dot(h, w0_ref[...], preferred_element_type=jnp.float32)
    h = _leaky_relu(h)

    h = b1_ref[...] + jnp.dot(h.astype(jnp.bfloat16), w1_ref[...],
                              preferred_element_type=jnp.float32)
    h = _leaky_relu(h)

    h = b2_ref[...] + jnp.dot(h.astype(jnp.bfloat16), w2_ref[...],
                              preferred_element_type=jnp.float32)
    h = _leaky_relu(h)

    h = b3_ref[...] + jnp.dot(h.astype(jnp.bfloat16), w3_ref[...],
                              preferred_element_type=jnp.float32)
    # tanh(0) = 0 in padded lanes; wrapper keeps only column 0.
    o_ref[...] = jnp.tanh(h)


def init_params(key):
    """Deterministic re-implementation of the module's kaiming_uniform / uniform init.

    Returns a list of (w, b) in f32 at the *logical* (unpadded) shapes.
    """
    params = []
    last_dim = INPUT_DIM
    for dim in HIDDEN + [OUT_DIM]:
        key, kw, kb = jax.random.split(key, 3)
        # kaiming_uniform_(weight.T, a=sqrt(5)) on shape (dim, last_dim):
        #   fan_in = last_dim, gain = sqrt(2 / (1 + 5)), bound = gain * sqrt(3 / fan_in)
        gain = math.sqrt(2.0 / (1.0 + 5.0))
        w_bound = gain * math.sqrt(3.0 / last_dim)
        w = jax.random.uniform(kw, (last_dim, dim), jnp.float32, -w_bound, w_bound)
        # bias: uniform(-1/sqrt(fan_in), 1/sqrt(fan_in)), fan_in = last_dim
        b_bound = 1.0 / math.sqrt(last_dim)
        b = jax.random.uniform(kb, (1, dim), jnp.float32, -b_bound, b_bound)
        params.append((w, b))
        last_dim = dim
    return params


def pack_params(params):
    """Kernel-facing params: K-pad layer 0, N-pad the last layer, weights -> bf16."""
    packed = []
    n_layers = len(params)
    for i, (w, b) in enumerate(params):
        if i == 0:
            w = jnp.pad(w, ((0, IN_PAD - w.shape[0]), (0, 0)))
        if i == n_layers - 1:
            w = jnp.pad(w, ((0, 0), (0, OUT_PAD - w.shape[1])))
            b = jnp.pad(b, ((0, 0), (0, OUT_PAD - b.shape[1])))
        packed.extend([w.astype(jnp.bfloat16), b.astype(jnp.float32)])
    return packed


def mlp_forward(x, packed_params, *, tile_b=512):
    """Batch-tiled forward pass. Returns shape (B,), matching torch .squeeze(-1)."""
    B, F = x.shape
    assert F == INPUT_DIM
    # Keep the tile a multiple of 8 sublanes and no larger than needed.
    tile_b = max(8, min(tile_b, pl.cdiv(B, 8) * 8))
    b_pad = pl.cdiv(B, tile_b) * tile_b

    x_p = jnp.pad(x.astype(jnp.float32),
                  ((0, b_pad - B), (0, IN_PAD - F)))

    # Weights/biases: full-array blocks, resident across the whole grid.
    resident_specs = [pl.BlockSpec(p.shape, lambda i: (0, 0)) for p in packed_params]

    out = pl.pallas_call(
        mlp_kernel,
        out_shape=jax.ShapeDtypeStruct((b_pad, OUT_PAD), jnp.float32),
        grid=(b_pad // tile_b,),
        in_specs=[pl.BlockSpec((tile_b, IN_PAD), lambda i: (i, 0))] + resident_specs,
        out_specs=pl.BlockSpec((tile_b, OUT_PAD), lambda i: (i, 0)),
        compiler_params=pltpu.CompilerParams(
            dimension_semantics=("parallel",)),
    )(x_p, *packed_params)

    return out[:B, 0]


if __name__ == "__main__":
    key = jax.random.PRNGKey(0)
    key, kx = jax.random.split(key)

    # Small but tiled: batch=64 with tile_b=16 -> grid of 4 batch tiles.
    # (For real MAML workloads, stack many tasks into the batch dimension so a
    #  single pallas_call amortizes dispatch overhead.)
    batch = 64
    x = jax.random.normal(kx, (batch, INPUT_DIM), dtype=jnp.float32)
    params = init_params(key)
    packed = pack_params(params)

    y = mlp_forward(x, packed, tile_b=16)
    jax.block_until_ready(y)

    # sanity: same math (bf16 matmul inputs, f32 accumulation) in plain JAX
    h = x
    for i, (w, b) in enumerate(params):
        h = b + jnp.dot(h.astype(jnp.bfloat16), w.astype(jnp.bfloat16),
                        preferred_element_type=jnp.float32)
        h = jnp.tanh(h) if i == len(params) - 1 else _leaky_relu(h)
    ref = h[:, 0]

    assert y.shape == (batch,)
    assert bool(jnp.all(jnp.isfinite(y)))
    assert jnp.allclose(y, ref, atol=1e-3, rtol=1e-3)

    print("KERNEL_OK")
</pallas_src>

<mosaic_0001>
module attributes {stable_mosaic.version = 11 : i64} {
  func.func @mlp_kernel(%arg0: i32, %arg1: memref<16x128xf32, #tpu.memory_space<vmem>>, %arg2: memref<128x256xbf16, #tpu.memory_space<vmem>>, %arg3: memref<1x256xf32, #tpu.memory_space<vmem>>, %arg4: memref<256x256xbf16, #tpu.memory_space<vmem>>, %arg5: memref<1x256xf32, #tpu.memory_space<vmem>>, %arg6: memref<256x256xbf16, #tpu.memory_space<vmem>>, %arg7: memref<1x256xf32, #tpu.memory_space<vmem>>, %arg8: memref<256x128xbf16, #tpu.memory_space<vmem>>, %arg9: memref<1x128xf32, #tpu.memory_space<vmem>>, %arg10: memref<16x128xf32, #tpu.memory_space<vmem>>) attributes {dimension_semantics = [#tpu.dimension_semantics<parallel>], iteration_bounds = array<i64: 4>, scalar_prefetch = 0 : i64, scratch_operands = 0 : i64, tpu.core_type = #tpu.core_type<tc>, window_params = [{transform_indices = @transform_0, window_bounds = array<i64: 16, 128>}, {pipeline_mode = #tpu.pipeline_mode<synchronous>, transform_indices = @transform_1, window_bounds = array<i64: 128, 256>}, {pipeline_mode = #tpu.pipeline_mode<synchronous>, transform_indices = @transform_2, window_bounds = array<i64: 1, 256>}, {pipeline_mode = #tpu.pipeline_mode<synchronous>, transform_indices = @transform_3, window_bounds = array<i64: 256, 256>}, {pipeline_mode = #tpu.pipeline_mode<synchronous>, transform_indices = @transform_4, window_bounds = array<i64: 1, 256>}, {pipeline_mode = #tpu.pipeline_mode<synchronous>, transform_indices = @transform_5, window_bounds = array<i64: 256, 256>}, {pipeline_mode = #tpu.pipeline_mode<synchronous>, transform_indices = @transform_6, window_bounds = array<i64: 1, 256>}, {pipeline_mode = #tpu.pipeline_mode<synchronous>, transform_indices = @transform_7, window_bounds = array<i64: 256, 128>}, {pipeline_mode = #tpu.pipeline_mode<synchronous>, transform_indices = @transform_8, window_bounds = array<i64: 1, 128>}, {transform_indices = @transform_9, window_bounds = array<i64: 16, 128>}]} {
    %c0 = arith.constant 0 : index
    %c0_0 = arith.constant 0 : index
    %0 = vector.load %arg1[%c0, %c0_0] : memref<16x128xf32, #tpu.memory_space<vmem>>, vector<16x128xf32>
    %1 = arith.truncf %0 : vector<16x128xf32> to vector<16x128xbf16>
    %c0_1 = arith.constant 0 : index
    %c0_2 = arith.constant 0 : index
    %2 = vector.load %arg3[%c0_1, %c0_2] : memref<1x256xf32, #tpu.memory_space<vmem>>, vector<1x256xf32>
    %c0_3 = arith.constant 0 : index
    %c0_4 = arith.constant 0 : index
    %3 = vector.load %arg2[%c0_3, %c0_4] : memref<128x256xbf16, #tpu.memory_space<vmem>>, vector<128x256xbf16>
    %cst = arith.constant dense<0.000000e+00> : vector<16x256xf32>
    %4 = tpu.matmul %1, %3, %cst {dimension_numbers = #tpu.dot_dimension_numbers<[1], [0], [0], [1], [0, 0, 1, 1], [], []>} : vector<16x128xbf16>, vector<128x256xbf16>, vector<16x256xf32> -> vector<16x256xf32>
    %5 = vector.broadcast %2 : vector<1x256xf32> to vector<16x256xf32>
    %6 = arith.addf %5, %4 : vector<16x256xf32>
    %cst_5 = arith.constant 0.000000e+00 : f32
    %7 = vector.broadcast %cst_5 : f32 to vector<16x256xf32>
    %8 = arith.cmpf ogt, %6, %7 : vector<16x256xf32>
    %cst_6 = arith.constant 0.00999999977 : f32
    %9 = vector.broadcast %cst_6 : f32 to vector<16x256xf32>
    %10 = arith.mulf %9, %6 : vector<16x256xf32>
    %11 = arith.select %8, %6, %10 : vector<16x256xi1>, vector<16x256xf32>
    %c0_7 = arith.constant 0 : index
    %c0_8 = arith.constant 0 : index
    %12 = vector.load %arg5[%c0_7, %c0_8] : memref<1x256xf32, #tpu.memory_space<vmem>>, vector<1x256xf32>
    %13 = arith.truncf %11 : vector<16x256xf32> to vector<16x256xbf16>
    %c0_9 = arith.constant 0 : index
    %c0_10 = arith.constant 0 : index
    %14 = vector.load %arg4[%c0_9, %c0_10] : memref<256x256xbf16, #tpu.memory_space<vmem>>, vector<256x256xbf16>
    %cst_11 = arith.constant dense<0.000000e+00> : vector<16x256xf32>
    %15 = tpu.matmul %13, %14, %cst_11 {dimension_numbers = #tpu.dot_dimension_numbers<[1], [0], [0], [1], [0, 0, 1, 1], [], []>} : vector<16x256xbf16>, vector<256x256xbf16>, vector<16x256xf32> -> vector<16x256xf32>
    %16 = vector.broadcast %12 : vector<1x256xf32> to vector<16x256xf32>
    %17 = arith.addf %16, %15 : vector<16x256xf32>
    %cst_12 = arith.constant 0.000000e+00 : f32
    %18 = vector.broadcast %cst_12 : f32 to vector<16x256xf32>
    %19 = arith.cmpf ogt, %17, %18 : vector<16x256xf32>
    %cst_13 = arith.constant 0.00999999977 : f32
    %20 = vector.broadcast %cst_13 : f32 to vector<16x256xf32>
    %21 = arith.mulf %20, %17 : vector<16x256xf32>
    %22 = arith.select %19, %17, %21 : vector<16x256xi1>, vector<16x256xf32>
    %c0_14 = arith.constant 0 : index
    %c0_15 = arith.constant 0 : index
    %23 = vector.load %arg7[%c0_14, %c0_15] : memref<1x256xf32, #tpu.memory_space<vmem>>, vector<1x256xf32>
    %24 = arith.truncf %22 : vector<16x256xf32> to vector<16x256xbf16>
    %c0_16 = arith.constant 0 : index
    %c0_17 = arith.constant 0 : index
    %25 = vector.load %arg6[%c0_16, %c0_17] : memref<256x256xbf16, #tpu.memory_space<vmem>>, vector<256x256xbf16>
    %cst_18 = arith.constant dense<0.000000e+00> : vector<16x256xf32>
    %26 = tpu.matmul %24, %25, %cst_18 {dimension_numbers = #tpu.dot_dimension_numbers<[1], [0], [0], [1], [0, 0, 1, 1], [], []>} : vector<16x256xbf16>, vector<256x256xbf16>, vector<16x256xf32> -> vector<16x256xf32>
    %27 = vector.broadcast %23 : vector<1x256xf32> to vector<16x256xf32>
    %28 = arith.addf %27, %26 : vector<16x256xf32>
    %cst_19 = arith.constant 0.000000e+00 : f32
    %29 = vector.broadcast %cst_19 : f32 to vector<16x256xf32>
    %30 = arith.cmpf ogt, %28, %29 : vector<16x256xf32>
    %cst_20 = arith.constant 0.00999999977 : f32
    %31 = vector.broadcast %cst_20 : f32 to vector<16x256xf32>
    %32 = arith.mulf %31, %28 : vector<16x256xf32>
    %33 = arith.select %30, %28, %32 : vector<16x256xi1>, vector<16x256xf32>
    %c0_21 = arith.constant 0 : index
    %c0_22 = arith.constant 0 : index
    %34 = vector.load %arg9[%c0_21, %c0_22] : memref<1x128xf32, #tpu.memory_space<vmem>>, vector<1x128xf32>
    %35 = arith.truncf %33 : vector<16x256xf32> to vector<16x256xbf16>
    %c0_23 = arith.constant 0 : index
    %c0_24 = arith.constant 0 : index
    %36 = vector.load %arg8[%c0_23, %c0_24] : memref<256x128xbf16, #tpu.memory_space<vmem>>, vector<256x128xbf16>
    %cst_25 = arith.constant dense<0.000000e+00> : vector<16x128xf32>
    %37 = tpu.matmul %35, %36, %cst_25 {dimension_numbers = #tpu.dot_dimension_numbers<[1], [0], [0], [1], [0, 0, 1, 1], [], []>} : vector<16x256xbf16>, vector<256x128xbf16>, vector<16x128xf32> -> vector<16x128xf32>
    %38 = vector.broadcast %34 : vector<1x128xf32> to vector<16x128xf32>
    %39 = arith.addf %38, %37 : vector<16x128xf32>
    %40 = math.tanh %39 : vector<16x128xf32>
    %c0_26 = arith.constant 0 : index
    %c0_27 = arith.constant 0 : index
    %41 = vector.load %arg10[%c0_26, %c0_27] : memref<16x128xf32, #tpu.memory_space<vmem>>, vector<16x128xf32>
    tpu.vector_store %arg10[%c0_26, %c0_27], %40 {strides = array<i32>} : memref<16x128xf32, #tpu.memory_space<vmem>>, vector<16x128xf32>,
    return
  }
  func.func @transform_0(%arg0: i32) -> (i32, i32) {
    %c0_i32 = arith.constant 0 : i32
    %c0_i32_0 = arith.constant 0 : i32
    return %arg0, %c0_i32 : i32, i32
  }
  func.func @transform_1(%arg0: i32) -> (i32, i32) {
    %c0_i32 = arith.constant 0 : i32
    %c0_i32_0 = arith.constant 0 : i32
    %c0_i32_1 = arith.constant 0 : i32
    return %c0_i32, %c0_i32_0 : i32, i32
  }
  func.func @transform_2(%arg0: i32) -> (i32, i32) {
    %c0_i32 = arith.constant 0 : i32
    %c0_i32_0 = arith.constant 0 : i32
    %c0_i32_1 = arith.constant 0 : i32
    return %c0_i32, %c0_i32_0 : i32, i32
  }
  func.func @transform_3(%arg0: i32) -> (i32, i32) {
    %c0_i32 = arith.constant 0 : i32
    %c0_i32_0 = arith.constant 0 : i32
    %c0_i32_1 = arith.constant 0 : i32
    return %c0_i32, %c0_i32_0 : i32, i32
  }
  func.func @transform_4(%arg0: i32) -> (i32, i32) {
    %c0_i32 = arith.constant 0 : i32
    %c0_i32_0 = arith.constant 0 : i32
    %c0_i32_1 = arith.constant 0 : i32
    return %c0_i32, %c0_i32_0 : i32, i32
  }
  func.func @transform_5(%arg0: i32) -> (i32, i32) {
    %c0_i32 = arith.constant 0 : i32
    %c0_i32_0 = arith.constant 0 : i32
    %c0_i32_1 = arith.constant 0 : i32
    return %c0_i32, %c0_i32_0 : i32, i32
  }
  func.func @transform_6(%arg0: i32) -> (i32, i32) {
    %c0_i32 = arith.constant 0 : i32
    %c0_i32_0 = arith.constant 0 : i32
    %c0_i32_1 = arith.constant 0 : i32
    return %c0_i32, %c0_i32_0 : i32, i32
  }
  func.func @transform_7(%arg0: i32) -> (i32, i32) {
    %c0_i32 = arith.constant 0 : i32
    %c0_i32_0 = arith.constant 0 : i32
    %c0_i32_1 = arith.constant 0 : i32
    return %c0_i32, %c0_i32_0 : i32, i32
  }
  func.func @transform_8(%arg0: i32) -> (i32, i32) {
    %c0_i32 = arith.constant 0 : i32
    %c0_i32_0 = arith.constant 0 : i32
    %c0_i32_1 = arith.constant 0 : i32
    return %c0_i32, %c0_i32_0 : i32, i32
  }
  func.func @transform_9(%arg0: i32) -> (i32, i32) {
    %c0_i32 = arith.constant 0 : i32
    %c0_i32_0 = arith.constant 0 : i32
    return %arg0, %c0_i32 : i32, i32
  }
}

</mosaic_0001>

<bundles_post_ra>
// kernel: tpu_custom_call.1
= control target key start
LH: loop header
LB: loop body
LE: loop exit
PB: predicated region body
PF: predicated region fallthrough
CT: control target
= control target key end

     0   :  { %s2396_s0 = inlined_call_operand.hbm [shape: f32[64,128], index: 0, kind: input, shape index: {}]   ;;  %s2397_s1 = inlined_call_operand.hbm [shape: bf16[128,256], index: 1, kind: input, shape index: {}]   ;;  %s2398_s2 = inlined_call_operand.vmem [shape: f32[1,256], index: 2, kind: input, shape index: {}]   ;;  %s2399_s3 = inlined_call_operand.hbm [shape: bf16[256,256], index: 3, kind: input, shape index: {}]   ;;  %s2400_s4 = inlined_call_operand.vmem [shape: f32[1,256], index: 4, kind: input, shape index: {}]   ;;  %s2401_s5 = inlined_call_operand.hbm [shape: bf16[256,256], index: 5, kind: input, shape index: {}]   ;;  %s2402_s6 = inlined_call_operand.vmem [shape: f32[1,256], index: 6, kind: input, shape index: {}]   ;;  %s2403_s7 = inlined_call_operand.hbm [shape: bf16[256,128], index: 7, kind: input, shape index: {}]   ;;  %s2404_s8 = inlined_call_operand.vmem [shape: f32[1,128], index: 8, kind: input, shape index: {}]   ;;  %s2405_s9 = inlined_call_operand.hbm [shape: f32[64,128], index: 9, kind: output, shape index: {}]  }
   0x1   :  { %2412 = sst [smem:[#allocation18_spill]] %s2405_s9 }
   0x2   :  { %14 = vsyncpa [#allocation3], 0 }
   0x3   :  { %16 = vsyncpa [#allocation3 + $0x1], 0 }
   0x4   :  { %17 = vsyncpa [#allocation6], 0 }
   0x5   :  { %18 = vsyncpa [#allocation9], 0 }
   0x6   :  { %19 = vsyncpa [#allocation4], 0 }
   0x7   :  { %21 = vsyncpa [#allocation4 + $0x1], 0  ;;  %s2079_s30 = smov 0   ;;  %s2081_s10 = smov 0  }
   0x8   :  { %s2083_s11 = smov 0   ;;  %s2085_s12 = smov 0  }
   0x9 LB: > { %2413 = sst [smem:[#allocation16_spill]] %s2002_s30  ;;  %s2100_s13 = sadd.s32 4294967295, %s2014_s12   ;;  %s2014_s12 = sphi %s2085_s12, %s2436_s12   ;;  %s2010_s11 = sphi %s2083_s11, %s2435_s11   ;;  %s2006_s10 = sphi %s2081_s10, %s2434_s10   ;;  %s2002_s30 = sphi %s2079_s30, %s2433_s30  }
   0xa   : > { %s1421_s14 = sadd.s32 4294967294, %s2014_s12   ;;  %p47_p0 = scmp.ne.s32.totalorder %s2006_s10, %s2002_s30 }
   0xb   : > { %p2406_p1 = scmp.eq.s32.totalorder %s2100_s13, 0  ;;  %p245_p3 = scmp.eq.s32.totalorder %s1421_s14, 3 }
   0xc   : > { %p1422_p5 = scmp.ge.s32.totalorder %s2014_s12, 1  ;;  %p252_p7 = scmp.lt.s32.totalorder %s2014_s12, 5 }
   0xd   : > { %p2109_p4 = por %p2406_p1, %p47_p0  ;;  %p2114_p6 = por %p245_p3, %p47_p0 }
   0xe   : > { %p2119_p8 = pnand %p1422_p5, %p252_p7  ;;  %s2016_s18 = smov [#allocation5]  }
   0xf   : > { %s2414_s15 = scalar_select %p2109_p4, 1, 0 }
  0x10   : > { %s2415_s16 = scalar_select %p2114_p6, 1, 0 }
  0x11   : > { %s2417_s17 = scalar_select %p2119_p8, 1, 0 }
  0x12   : > { %2416 = sst [smem:[#allocation17_spill]] %s2415_s16  ;;  %s264_s19 = sshll.u32 %s2016_s18, 4  ;;  %s2123_s19 = int_to_ptr.vmem [resolvable:$true] %s264_s19 }
  0x13   : > { %p1584_p9 = pneg %p2119_p8  ;;  %s2017_s21 = smov [#allocation8]  }
  0x14   : > { %s296_s22 = sshll.u32 %s2017_s21, 4  ;;  %s2018_s23 = smov [#allocation7]   ;;  %s2133_s22 = int_to_ptr.vmem [resolvable:$true] %s296_s22 }
  0x15   : > { %p2129_p10 = pnand %p1584_p9, %p2406_p1  ;;  %s2135_s24 = sshll.u32 %s2018_s23, 4  ;;  %s281_s24 = int_to_ptr.vmem [resolvable:$true] %s2135_s24 }
  0x16   : > { %s1798_s27 = scalar_lea.hbm %s2397_s1, 2048 }
  0x17   : > { %p1799_p11 = scmp.ne.s32.totalorder %s2397_s1, %s1798_s27  ;;  %p2145_p12 = pneg %p2129_p10 }
  0x18   : > { %p1805_p3 = scmp.lt.u32.totalorder %s1798_s27, %s2397_s1 }
  0x19   : > { %p1801_p13 = pnand %p2145_p12, %p1799_p11 }
  0x1b   : > { %p1802_p0 = pneg %p1801_p13 }
  0x1d   : > { %p1807_p5 = pnand %p1805_p3, %p1802_p0 }
  0x1f   : > { %1810 = shalt.err (!%p1807_p5)
}
  0x20   : > { %s1811_s23 = scalar_lea.vmem %s2123_s19, 2048  ;;  %p1819_p2 = scmp.lt.s32.totalorder %s2123_s19, %s2123_s19 }
  0x21   : > { %p1812_p7 = scmp.ne.s32.totalorder %s2123_s19, %s1811_s23  ;;  %p1820_p6 = scmp.lt.s32.totalorder %s1811_s23, %s1811_s23 }
  0x23   : > { %p1814_p9 = pnand %p1812_p7, %p2145_p12  ;;  %p1821_p11 = por %p1820_p6, %p1819_p2 }
  0x25   : > { %p1815_p1 = pneg %p1814_p9 }
  0x27   : > { %p1822_p13 = pnand %p1821_p11, %p1815_p1 }
  0x29   : > { %1825 = shalt.err (!%p1822_p13)
}
  0x2a   : > { %s2019_s25 = smov 128   ;;  %s2020_s26 = smov 8  }
  0x2b   : > { %1587 = dma.hbm_to_vmem [thread:$0]  (!%p2129_p10), %s2397_s1, 2048, %s2123_s19, [#allocation6], %s2019_s25, %s2019_s25, %s2020_s26  }
  0x2c   : > { %s1826_s21 = scalar_lea.hbm %s2401_s5, 4096 }
  0x2d   : > { %p1827_p1 = scmp.ne.s32.totalorder %s2401_s5, %s1826_s21  ;;  %p1833_p0 = scmp.lt.u32.totalorder %s1826_s21, %s2401_s5 }
  0x2f   : > { %p1829_p2 = pnand %p1827_p1, %p2145_p12 }
  0x31   : > { %p1830_p6 = pneg %p1829_p2 }
  0x33   : > { %p1835_p3 = pnand %p1833_p0, %p1830_p6 }
  0x35   : > { %1838 = shalt.err (!%p1835_p3)
}
  0x36   : > { %s1839_s19 = scalar_lea.vmem %s2133_s22, 4096  ;;  %p1847_p11 = scmp.lt.s32.totalorder %s2133_s22, %s2133_s22 }
  0x37   : > { %p1840_p5 = scmp.ne.s32.totalorder %s2133_s22, %s1839_s19  ;;  %p1848_p13 = scmp.lt.s32.totalorder %s1839_s19, %s1839_s19 }
  0x39   : > { %p1842_p7 = pnand %p1840_p5, %p2145_p12  ;;  %p1849_p1 = por %p1848_p13, %p1847_p11 }
  0x3b   : > { %p1843_p9 = pneg %p1842_p7 }
  0x3d   : > { %p1850_p2 = pnand %p1849_p1, %p1843_p9 }
  0x3f   : > { %1853 = shalt.err (!%p1850_p2)
}
  0x40   : > { %1593 = dma.hbm_to_vmem [thread:$0]  (!%p2129_p10), %s2401_s5, 4096, %s2133_s22, [#allocation9], %s2019_s25, %s2019_s25, %s2020_s26  }
  0x41   : > { %s1854_s28 = scalar_lea.hbm %s2399_s3, 4096 }
  0x42   : > { %p1855_p6 = scmp.ne.s32.totalorder %s2399_s3, %s1854_s28  ;;  %p1861_p5 = scmp.lt.u32.totalorder %s1854_s28, %s2399_s3 }
  0x44   : > { %p1857_p0 = pnand %p1855_p6, %p2145_p12 }
  0x46   : > { %p1858_p3 = pneg %p1857_p0 }
  0x48   : > { %p1863_p7 = pnand %p1861_p5, %p1858_p3 }
  0x4a   : > { %1866 = shalt.err (!%p1863_p7)
}
  0x4b   : > { %s1867_s19 = scalar_lea.vmem %s281_s24, 4096  ;;  %p1875_p1 = scmp.lt.s32.totalorder %s281_s24, %s281_s24 }
  0x4c   : > { %p1868_p9 = scmp.ne.s32.totalorder %s281_s24, %s1867_s19  ;;  %p1876_p2 = scmp.lt.s32.totalorder %s1867_s19, %s1867_s19 }
  0x4e   : > { %p1870_p11 = pnand %p1868_p9, %p2145_p12  ;;  %p1877_p4 = por %p1876_p2, %p1875_p1 }
  0x50   : > { %p1871_p13 = pneg %p1870_p11 }
  0x52   : > { %p1878_p8 = pnand %p1877_p4, %p1871_p13 }
  0x54   : > { %1881 = shalt.err (!%p1878_p8)
}
  0x55   : > { %1590 = dma.hbm_to_vmem [thread:$0]  (!%p2129_p10), %s2399_s3, 4096, %s281_s24, [#allocation6], %s2019_s25, %s2019_s25, %s2020_s26  }
  0x56   : > { %s2021_s30 = smov [#allocation10]   ;;  %s1882_s29 = scalar_lea.hbm %s2403_s7, 2048 }
  0x57   : > { %s312_s16 = sshll.u32 %s2021_s30, 4  ;;  %p1883_p4 = scmp.ne.s32.totalorder %s2403_s7, %s1882_s29  ;;  %s313_s16 = int_to_ptr.vmem [resolvable:$true] %s312_s16 }
  0x58   : > { %p1889_p0 = scmp.lt.u32.totalorder %s1882_s29, %s2403_s7 }
  0x59   : > { %p1885_p8 = pnand %p1883_p4, %p2145_p12 }
  0x5b   : > { %p1886_p6 = pneg %p1885_p8 }
  0x5d   : > { %p1891_p3 = pnand %p1889_p0, %p1886_p6 }
  0x5f   : > { %1894 = shalt.err (!%p1891_p3)
}
  0x60   : > { %s1895_s24 = scalar_lea.vmem %s313_s16, 2048  ;;  %p1903_p11 = scmp.lt.s32.totalorder %s313_s16, %s313_s16 }
  0x61   : > { %p1896_p5 = scmp.ne.s32.totalorder %s313_s16, %s1895_s24  ;;  %p1904_p13 = scmp.lt.s32.totalorder %s1895_s24, %s1895_s24 }
  0x63   : > { %p1898_p7 = pnand %p1896_p5, %p2145_p12  ;;  %p1905_p1 = por %p1904_p13, %p1903_p11 }
  0x65   : > { %p1899_p9 = pneg %p1898_p7 }
  0x67   : > { %p1906_p2 = pnand %p1905_p1, %p1899_p9 }
  0x69   : > { %1909 = shalt.err (!%p1906_p2)
}
  0x6a   : > { %s2022_s22 = smov 64   ;;  %s2023_s14 = smov 4  }
  0x6b   : > { %1596 = dma.hbm_to_vmem [thread:$0]  (!%p2129_p10), %s2403_s7, 2048, %s313_s16, [#allocation9], %s2022_s22, %s2022_s22, %s2023_s14  }
  0x6c   : > { %s2236_s27 = sadd.s32 1, %s2014_s12   ;;  %s34_s29 = sadd.s32 1, %s2010_s11 }
  0x6d   : > { %s31_s28 = ssub.s32 %s2014_s12, %s2236_s27  ;;  %p41_p4 = scmp.ne.s32.totalorder %s2010_s11, %s2006_s10 }
  0x6e   : > { %p32_p12 = scmp.eq.s32.totalorder %s31_s28, 0  ;;  %p42_p8 = scmp.eq.s32.totalorder %s2014_s12, 0 }
  0x6f   : > { %p2420_p0 = scmp.eq.s32.totalorder %s2100_s13, 3  ;;  %p1609_p5 = scmp.lt.s32.totalorder %s2014_s12, 4 }
  0x70   : > { %s2245_s18 = scalar_select %p32_p12, %s2010_s11, %s34_s29  }
  0x71   : > { %p43_p6 = por %p42_p8, %p41_p4  ;;  %p2249_p3 = por %p2420_p0, %p41_p4 }
  0x72   : > { %s329_s20 = sand.u32 1, %s2010_s11   ;;  %s1540_s16 = sshll.u32 %s2014_s12, 8 }
  0x73   : > { %s1428_s23 = sshll.u32 %s329_s20, 4  ;;  %s2259_s22 = scalar_lea.hbm %s2396_s0, %s1540_s16 }
  0x74   : > { %s333_s14 = scalar_lea.vmem [#allocation2], %s1428_s23  ;;  %p2263_p10 = pnand %p1609_p5, %p43_p6 }
  0x75   : > { %s340_s9 = sshll.u32 %s333_s14, 4  ;;  %s2267_s28 = scalar_lea.sflag [#allocation3], %s329_s20  ;;  %s2261_s9 = int_to_ptr.vmem [resolvable:$true] %s340_s9 }
  0x76   : > { %s1910_s29 = scalar_lea.hbm %s2259_s22, 256  ;;  %p1912_p9 = pneg %p2263_p10 }
  0x77   : > { %p1911_p7 = scmp.ne.s32.totalorder %s2259_s22, %s1910_s29  ;;  %s1915_s19 = scalar_lea.hbm %s2396_s0, 1024 }
  0x78   : > { %p1916_p1 = scmp.lt.u32.totalorder %s2259_s22, %s2396_s0  ;;  %p1917_p2 = scmp.lt.u32.totalorder %s1915_s19, %s1910_s29 }
  0x79   : > { %p1913_p11 = pnand %p1912_p9, %p1911_p7  ;;  %p1919_p4 = scmp.lt.u32.totalorder %s1910_s29, %s2259_s22 }
  0x7a   : > { %p1918_p12 = por %p1917_p2, %p1916_p1 }
  0x7b   : > { %p1914_p13 = pneg %p1913_p11 }
  0x7c   : > { %p1920_p8 = por %p1919_p4, %p1918_p12 }
  0x7e   : > { %p1921_p6 = pnand %p1920_p8, %p1914_p13 }
  0x80   : > { %1924 = shalt.err (!%p1921_p6)
}
  0x81   : > { %s1925_s20 = scalar_lea.vmem %s2261_s9, 256  ;;  %s2024_s23 = smov [#allocation2]  }
  0x82   : > { %p1926_p0 = scmp.ne.s32.totalorder %s2261_s9, %s1925_s20  ;;  %s1930_s16 = sshll.u32 %s2024_s23, 4  ;;  %s1931_s16 = int_to_ptr.vmem [resolvable:$false] %s1930_s16 }
  0x83   : > { %s1932_s24 = scalar_lea.vmem %s1931_s16, 512  ;;  %p1933_p11 = scmp.lt.s32.totalorder %s2261_s9, %s1931_s16 }
  0x84   : > { %p1928_p5 = pnand %p1926_p0, %p1912_p9  ;;  %p1934_p1 = scmp.lt.s32.totalorder %s1932_s24, %s1925_s20 }
  0x86   : > { %p1929_p7 = pneg %p1928_p5  ;;  %p1935_p2 = por %p1934_p1, %p1933_p11 }
  0x88   : > { %p1936_p12 = pnand %p1935_p2, %p1929_p7 }
  0x8a   : > { %1939 = shalt.err (!%p1936_p12)
}
  0x8b   : > { %1600 = dma.hbm_to_vmem [thread:$0]  (!%p2263_p10), %s2259_s22, 256, %s2261_s9, %s2267_s28, %s2019_s25, %s2019_s25, %s2020_s26  }
  0x8c   : > { %p2423_p9 = scmp.ne.s32.totalorder %s2417_s17, 0 }
  0x8d   : > { %s2301_s29 = sand.u32 (!%p2423_p9), 1, %s2006_s10   ;;  %p2424_p13 = scmp.ne.s32.totalorder (!%p2423_p9), %s2414_s15, 0 }
  0x8e   : > { %352 = sbr.rel (%p2423_p9) target bundleno = 1104 (0x450), region = 56  ;;  %s1432_s19 = sshll.u32 (!%p2423_p9), %s2301_s29, 4 }
  0x8f   : > { %s355_s14 = scalar_lea.sflag (!%p2423_p9), [#allocation3], %s2301_s29  ;;  %s2307_s30 = scalar_lea.vmem (!%p2423_p9), [#allocation2], %s1432_s19 }
  0x95   : > { %1985 = dma.done.wait (%p2424_p13), %s355_s14, 256  }
  0x96   : > { %1987 = vsyncadd (%p2424_p13), %s355_s14, 4294967040  ;;  %p2425_p10 = scmp.eq.s32.totalorder %s2100_s13, 0 }
  0x98   : > { %1989 = dma.done.wait (%p2425_p10), [#allocation6], 6144   ;;  %p2426_p4 = pmov %p2425_p10 }
  0x9a   : > { %1991 = vsyncadd (%p2426_p4), [#allocation6], 4294961152  ;;  %p2427_p8 = pmov %p2426_p4 }
  0x9b   : > { %p2428_p6 = pmov %p2426_p4 }
  0x9c   : > { %1993 = dma.done.wait (%p2427_p8), [#allocation9], 6144  }
  0x9d   : > { %1995 = vsyncadd (%p2428_p6), [#allocation9], 4294961152  ;;  %v2025_v0 = vmov 0   ;;  %v1658_v1 = vld [vmem:[#allocation5 + $0x4] ss:$8 sps:$4 sm:$0xff]   ;;  %s1541_s23 = sshll.u32 %s2100_s13, 8 }
  0x9e   : > { %544 = vmatprep.mubr.bf16.mxu0 %v2025_v0  ;;  %v1660_v2 = vld [vmem:[#allocation5] ss:$8 sps:$4 sm:$0xff]   ;;  %512 = vmatprep.subr.bf16.mxu0 %v1658_v1  ;;  %v1661_v3 = vld [vmem:[#allocation5 + $0x14] ss:$8 sps:$4 sm:$0xff]   ;;  %v1663_v4 = vld [vmem:[#allocation5 + $0x10] ss:$8 sps:$4 sm:$0xff]  }
  0x9f   : > { %513 = vmatpush1.bf16.msra.mxu0 %v1660_v2  ;;  %v1664_v5 = vld [vmem:[#allocation5 + $0x24] ss:$8 sps:$4 sm:$0xff]   ;;  %v1666_v6 = vld [vmem:[#allocation5 + $0x20] ss:$8 sps:$4 sm:$0xff]   ;;  %v1667_v7 = vld [vmem:[#allocation5 + $0x34] ss:$8 sps:$4 sm:$0xff]  }
  0xa0   : > { %514 = vmatprep.subr.bf16.mxu0 %v1661_v3  ;;  %v1669_v8 = vld [vmem:[#allocation5 + $0x30] ss:$8 sps:$4 sm:$0xff]   ;;  %v1670_v9 = vld [vmem:[#allocation5 + $0x44] ss:$8 sps:$4 sm:$0xff]   ;;  %v1684_v11 = vld [vmem:[#allocation7] ss:$8 sps:$4 sm:$0xff]  }
  0xa1   : > { %v1682_v10 = vld [vmem:[#allocation7 + $0x4] ss:$8 sps:$4 sm:$0xff]   ;;  %v1685_v12 = vld [vmem:[#allocation7 + $0x14] ss:$8 sps:$4 sm:$0xff]   ;;  %v1672_v13 = vld [vmem:[#allocation5 + $0x40] ss:$8 sps:$4 sm:$0xff]  }
  0xa2   : > { %777 = vmatprep.subr.bf16.mxu1 %v1682_v10  ;;  %v1687_v14 = vld [vmem:[#allocation7 + $0x10] ss:$8 sps:$4 sm:$0xff]   ;;  %v1673_v15 = vld [vmem:[#allocation5 + $0x54] ss:$8 sps:$4 sm:$0xff]   ;;  %v1688_v16 = vld [vmem:[#allocation7 + $0x24] ss:$8 sps:$4 sm:$0xff]  }
  0xa3   : > { %515 = vmatpush1.bf16.msra.mxu0 %v1663_v4  ;;  %778 = vmatpush1.bf16.msra.mxu1 %v1684_v11  ;;  %v1675_v17 = vld [vmem:[#allocation5 + $0x50] ss:$8 sps:$4 sm:$0xff]   ;;  %v1690_v18 = vld [vmem:[#allocation7 + $0x20] ss:$8 sps:$4 sm:$0xff]   ;;  %v1676_v19 = vld [vmem:[#allocation5 + $0x64] ss:$8 sps:$4 sm:$0xff]  }
  0xa4   : > { %516 = vmatprep.subr.bf16.mxu0 %v1664_v5  ;;  %779 = vmatprep.subr.bf16.mxu1 %v1685_v12  ;;  %v1691_v20 = vld [vmem:[#allocation7 + $0x34] ss:$8 sps:$4 sm:$0xff]   ;;  %v1678_v21 = vld [vmem:[#allocation5 + $0x60] ss:$8 sps:$4 sm:$0xff]   ;;  %v1693_v22 = vld [vmem:[#allocation7 + $0x30] ss:$8 sps:$4 sm:$0xff]  }
  0xa5   : > { %v1679_v23 = vld [vmem:[#allocation5 + $0x74] ss:$8 sps:$4 sm:$0xff]   ;;  %v1694_v24 = vld [vmem:[#allocation7 + $0x44] ss:$8 sps:$4 sm:$0xff]   ;;  %v1681_v25 = vld [vmem:[#allocation5 + $0x70] ss:$8 sps:$4 sm:$0xff]  }
  0xa6   : > { %v412_v26 = vld [vmem:[%s2307_s30] sm:$0xff]  ;;  %v413_v27 = vld [vmem:[%s2307_s30 + $0x8] sm:$0xff]  ;;  %s408_s16 = scalar_lea.vmem [#allocation11], %s1432_s19  ;;  %s2429_s15 = sld [smem:[#allocation18_spill]] }
  0xa7   : > { %517 = vmatpush1.bf16.msra.mxu0 %v1666_v6  ;;  %780 = vmatpush1.bf16.msra.mxu1 %v1687_v14  ;;  %v1696_v28 = vld [vmem:[#allocation7 + $0x40] ss:$8 sps:$4 sm:$0xff]   ;;  %v1697_v29 = vld [vmem:[#allocation7 + $0x54] ss:$8 sps:$4 sm:$0xff]   ;;  %v1699_v30 = vld [vmem:[#allocation7 + $0x50] ss:$8 sps:$4 sm:$0xff]   ;;  %v414_v31 = vpack.c.bf16 %v413_v27, %v412_v26  ;;  %v556_v14 = vlaneseq }
  0xa8   : > { %518 = vmatprep.subr.bf16.mxu0 %v1667_v7  ;;  %781 = vmatprep.subr.bf16.mxu1 %v1688_v16  ;;  %v1700_v32 = vld [vmem:[#allocation7 + $0x64] ss:$8 sps:$4 sm:$0xff]   ;;  %v1702_v33 = vld [vmem:[#allocation7 + $0x60] ss:$8 sps:$4 sm:$0xff]   ;;  %v1703_v34 = vld [vmem:[#allocation7 + $0x74] ss:$8 sps:$4 sm:$0xff]  }
  0xa9   : > { %v1705_v35 = vld [vmem:[#allocation7 + $0x70] ss:$8 sps:$4 sm:$0xff]   ;;  %v1706_v36 = vld [vmem:[#allocation7 + $0x84] ss:$8 sps:$4 sm:$0xff]   ;;  %v1708_v37 = vld [vmem:[#allocation7 + $0x80] ss:$8 sps:$4 sm:$0xff]  }
  0xaa   : > { %v1709_v38 = vld [vmem:[#allocation7 + $0x94] ss:$8 sps:$4 sm:$0xff]   ;;  %v1711_v39 = vld [vmem:[#allocation7 + $0x90] ss:$8 sps:$4 sm:$0xff]   ;;  %v1712_v40 = vld [vmem:[#allocation7 + $0xa4] ss:$8 sps:$4 sm:$0xff]  }
  0xab   : > { %519 = vmatpush1.bf16.msra.mxu0 %v1669_v8  ;;  %782 = vmatpush1.bf16.msra.mxu1 %v1690_v18  ;;  %v1714_v41 = vld [vmem:[#allocation7 + $0xa0] ss:$8 sps:$4 sm:$0xff]   ;;  %v1715_v42 = vld [vmem:[#allocation7 + $0xb4] ss:$8 sps:$4 sm:$0xff]   ;;  %v1717_v43 = vld [vmem:[#allocation7 + $0xb0] ss:$8 sps:$4 sm:$0xff]  }
  0xac   : > { %520 = vmatprep.subr.bf16.mxu0 %v1670_v9  ;;  %783 = vmatprep.subr.bf16.mxu1 %v1691_v20  ;;  %v1718_v44 = vld [vmem:[#allocation7 + $0xc4] ss:$8 sps:$4 sm:$0xff]   ;;  %v1720_v45 = vld [vmem:[#allocation7 + $0xc0] ss:$8 sps:$4 sm:$0xff]   ;;  %v1721_v46 = vld [vmem:[#allocation7 + $0xd4] ss:$8 sps:$4 sm:$0xff]   ;;  %s2351_s17 = scalar_lea.hbm %s2429_s15, %s1541_s23 }
  0xad   : > { %v1723_v47 = vld [vmem:[#allocation7 + $0xd0] ss:$8 sps:$4 sm:$0xff]   ;;  %v1724_v48 = vld [vmem:[#allocation7 + $0xe4] ss:$8 sps:$4 sm:$0xff]   ;;  %v1726_v49 = vld [vmem:[#allocation7 + $0xe0] ss:$8 sps:$4 sm:$0xff]  }
  0xae   : > { %v1727_v50 = vld [vmem:[#allocation7 + $0xf4] ss:$8 sps:$4 sm:$0xff]   ;;  %v1729_v51 = vld [vmem:[#allocation7 + $0xf0] ss:$8 sps:$4 sm:$0xff]   ;;  %v1730_v52 = vld [vmem:[#allocation8] ss:$8 sps:$4 sm:$0xff]  }
  0xaf   : > { %521 = vmatpush1.bf16.msra.mxu0 %v1672_v13  ;;  %784 = vmatpush1.bf16.msra.mxu1 %v1693_v22  ;;  %v1732_v53 = vld [vmem:[#allocation8 + $0x4] ss:$8 sps:$4 sm:$0xff]   ;;  %v1735_v54 = vld [vmem:[#allocation8 + $0x14] ss:$8 sps:$4 sm:$0xff]   ;;  %v1733_v55 = vld [vmem:[#allocation8 + $0x10] ss:$8 sps:$4 sm:$0xff]  }
  0xb0   : > { %522 = vmatprep.subr.bf16.mxu0 %v1673_v15  ;;  %785 = vmatprep.subr.bf16.mxu1 %v1694_v24  ;;  %v1738_v56 = vld [vmem:[#allocation8 + $0x24] ss:$8 sps:$4 sm:$0xff]   ;;  %v1736_v57 = vld [vmem:[#allocation8 + $0x20] ss:$8 sps:$4 sm:$0xff]   ;;  %v1741_v58 = vld [vmem:[#allocation8 + $0x34] ss:$8 sps:$4 sm:$0xff]  }
  0xb1   : > { %v1739_v59 = vld [vmem:[#allocation8 + $0x30] ss:$8 sps:$4 sm:$0xff]   ;;  %v1744_v60 = vld [vmem:[#allocation8 + $0x44] ss:$8 sps:$4 sm:$0xff]   ;;  %v1742_v61 = vld [vmem:[#allocation8 + $0x40] ss:$8 sps:$4 sm:$0xff]  }
  0xb2   : > { %v1747_v62 = vld [vmem:[#allocation8 + $0x54] ss:$8 sps:$4 sm:$0xff]   ;;  %v1745_v63 = vld [vmem:[#allocation8 + $0x50] ss:$8 sps:$4 sm:$0xff]   ;;  %v1750_v0 = vld [vmem:[#allocation8 + $0x64] ss:$8 sps:$4 sm:$0xff]  }
  0xb3   : > { %523 = vmatpush1.bf16.msra.mxu0 %v1675_v17  ;;  %786 = vmatpush1.bf16.msra.mxu1 %v1696_v28  ;;  %v1748_v1 = vld [vmem:[#allocation8 + $0x60] ss:$8 sps:$4 sm:$0xff]   ;;  %v1753_v2 = vld [vmem:[#allocation8 + $0x74] ss:$8 sps:$4 sm:$0xff]   ;;  %v1751_v3 = vld [vmem:[#allocation8 + $0x70] ss:$8 sps:$4 sm:$0xff]  }
  0xb4   : > { %524 = vmatprep.subr.bf16.mxu0 %v1676_v19  ;;  %787 = vmatprep.subr.bf16.mxu1 %v1697_v29  ;;  %v1756_v4 = vld [vmem:[#allocation8 + $0x84] ss:$8 sps:$4 sm:$0xff]   ;;  %v1754_v5 = vld [vmem:[#allocation8 + $0x80] ss:$8 sps:$4 sm:$0xff]   ;;  %v1759_v6 = vld [vmem:[#allocation8 + $0x94] ss:$8 sps:$4 sm:$0xff]  }
  0xb5   : > { %v1757_v7 = vld [vmem:[#allocation8 + $0x90] ss:$8 sps:$4 sm:$0xff]   ;;  %v1762_v8 = vld [vmem:[#allocation8 + $0xa4] ss:$8 sps:$4 sm:$0xff]   ;;  %v1760_v9 = vld [vmem:[#allocation8 + $0xa0] ss:$8 sps:$4 sm:$0xff]  }
  0xb6   : > { %v1765_v10 = vld [vmem:[#allocation8 + $0xb4] ss:$8 sps:$4 sm:$0xff]   ;;  %v1763_v11 = vld [vmem:[#allocation8 + $0xb0] ss:$8 sps:$4 sm:$0xff]   ;;  %v1768_v12 = vld [vmem:[#allocation8 + $0xc4] ss:$8 sps:$4 sm:$0xff]  }
  0xb7   : > { %525 = vmatpush1.bf16.msra.mxu0 %v1678_v21  ;;  %788 = vmatpush1.bf16.msra.mxu1 %v1699_v30  ;;  %v1766_v13 = vld [vmem:[#allocation8 + $0xc0] ss:$8 sps:$4 sm:$0xff]   ;;  %v557_v15 = vshrl.u32 %v556_v14, 7  ;;  %v1790_v14 = vld [vmem:[#allocation10 + $0x70] sm:$0xff]   ;;  %s1310_s24 = sshll.u32 %s408_s16, 4  ;;  %s1297_s25 = scalar_lea.sflag [#allocation4], %s2301_s29  ;;  %s2353_s24 = int_to_ptr.vmem [resolvable:$true] %s1310_s24 }
  0xb8   : > { %526 = vmatprep.subr.bf16.mxu0 %v1679_v23  ;;  %789 = vmatprep.subr.bf16.mxu1 %v1700_v32  ;;  %v415_v17 = vld [vmem:[%s2398_s2] sm:$0x3]  ;;  %s1940_s26 = scalar_lea.vmem %s2353_s24, 256  ;;  %s2026_s13 = smov [#allocation11]  }
  0xb9   : > { %v2323_v16 = vsub.s32 0, %v557_v15  ;;  %v2328_v18 = vsub.s32 1, %v557_v15  ;;  %v1791_v15 = vld [vmem:[#allocation10 + $0x30] sm:$0xff]   ;;  %p1941_p0 = scmp.ne.s32.totalorder %s2353_s24, %s1940_s26  ;;  %s1944_s19 = sshll.u32 %s2026_s13, 4  ;;  %s1945_s19 = int_to_ptr.vmem [resolvable:$false] %s1944_s19 }
  0xba   : > { %s1946_s22 = scalar_lea.vmem %s1945_s19, 512  ;;  %p1947_p11 = scmp.lt.s32.totalorder %s2353_s24, %s1945_s19 }
  0xbb   : > { %527 = vmatpush1.bf16.msra.mxu0 %v1681_v25  ;;  %790 = vmatpush1.bf16.msra.mxu1 %v1702_v33  ;;  %v559_v19 = vrot.slane %v415_v17, %v2323_v16  ;;  %v563_v20 = vrot.slane %v415_v17, %v2328_v18  ;;  %v1792_v17 = vld [vmem:[#allocation10 + $0x78] sm:$0xff]   ;;  %p1942_p5 = pnand %p1941_p0, %p2249_p3  ;;  %p1948_p1 = scmp.lt.s32.totalorder %s1946_s22, %s1940_s26 }
  0xbc   : > { %791 = vmatprep.subr.bf16.mxu1 %v1703_v34  ;;  %1042 = vmatprep.subr.bf16.mxu0 %v1732_v53  ;;  %v1786_v53 = vld [vmem:[#allocation10 + $0x60] sm:$0xff]  }
  0xbd   : > { %p1943_p7 = pneg %p1942_p5  ;;  %p1949_p2 = por %p1948_p1, %p1947_p11 }
  0xbe   : > { %545 = vmatmul.mubr.bf16.vlgmr.msra.gmra.mrb[0].mxu0 %v414_v31 }
  0xbf   : > { %792 = vmatpush1.bf16.msra.mxu1 %v1705_v35  ;;  %1043 = vmatpush1.bf16.msra.mxu0 %v1730_v52  ;;  %v1785_v52 = vld [vmem:[#allocation10 + $0x18] sm:$0xff]   ;;  %p1950_p12 = pnand %p1949_p2, %p1943_p7 }
  0xc0   : > { %793 = vmatprep.subr.bf16.mxu1 %v1706_v36  ;;  %1044 = vmatprep.subr.bf16.mxu0 %v1735_v54  ;;  %v1787_v54 = vld [vmem:[#allocation10 + $0x20] sm:$0xff]  }
  0xc3   : > { %794 = vmatpush1.bf16.msra.mxu1 %v1708_v37  ;;  %1045 = vmatpush1.bf16.msra.mxu0 %v1733_v55  ;;  %v582_v55 = vld [vmem:[%s2400_s4] sm:$0x3] }
  0xc4   : > { %795 = vmatprep.subr.bf16.mxu1 %v1709_v38  ;;  %1046 = vmatprep.subr.bf16.mxu0 %v1738_v56  ;;  %v824_v56 = vrot.slane %v582_v55, %v2323_v16 }
  0xc7   : > { %796 = vmatpush1.bf16.msra.mxu1 %v1711_v39  ;;  %1047 = vmatpush1.bf16.msra.mxu0 %v1736_v57  ;;  %v1771_v39 = vld [vmem:[#allocation8 + $0xd4] ss:$8 sps:$4 sm:$0xff]   ;;  %v828_v57 = vrot.slane %v582_v55, %v2328_v18 }
  0xc8   : > { %797 = vmatprep.subr.bf16.mxu1 %v1712_v40  ;;  %1048 = vmatprep.subr.bf16.mxu0 %v1741_v58  ;;  %v1769_v40 = vld [vmem:[#allocation8 + $0xd0] ss:$8 sps:$4 sm:$0xff]  }
  0xcb   : > { %798 = vmatpush1.bf16.msra.mxu1 %v1714_v41  ;;  %1049 = vmatpush1.bf16.msra.mxu0 %v1739_v59  ;;  %v1774_v41 = vld [vmem:[#allocation8 + $0xe4] ss:$8 sps:$4 sm:$0xff]  }
  0xcc   : > { %799 = vmatprep.subr.bf16.mxu1 %v1715_v42  ;;  %1050 = vmatprep.subr.bf16.mxu0 %v1744_v60  ;;  %v1772_v42 = vld [vmem:[#allocation8 + $0xe0] ss:$8 sps:$4 sm:$0xff]  }
  0xcf   : > { %800 = vmatpush1.bf16.msra.mxu1 %v1717_v43  ;;  %1051 = vmatpush1.bf16.msra.mxu0 %v1742_v61  ;;  %v1777_v43 = vld [vmem:[#allocation8 + $0xf4] ss:$8 sps:$4 sm:$0xff]  }
  0xd0   : > { %801 = vmatprep.subr.bf16.mxu1 %v1718_v44  ;;  %1052 = vmatprep.subr.bf16.mxu0 %v1747_v62  ;;  %v1775_v44 = vld [vmem:[#allocation8 + $0xf0] ss:$8 sps:$4 sm:$0xff]  }
  0xd3   : > { %802 = vmatpush1.bf16.msra.mxu1 %v1720_v45  ;;  %1053 = vmatpush1.bf16.msra.mxu0 %v1745_v63  ;;  %v1778_v45 = vld [vmem:[#allocation10 + $0x40] sm:$0xff]  }
  0xd4   : > { %803 = vmatprep.subr.bf16.mxu1 %v1721_v46  ;;  %1054 = vmatprep.subr.bf16.mxu0 %v1750_v0  ;;  %v1779_v46 = vld [vmem:[#allocation10] sm:$0xff]  }
  0xd7   : > { %804 = vmatpush1.bf16.msra.mxu1 %v1723_v47  ;;  %1055 = vmatpush1.bf16.msra.mxu0 %v1748_v1  ;;  %v1780_v47 = vld [vmem:[#allocation10 + $0x48] sm:$0xff]  }
  0xd8   : > { %805 = vmatprep.subr.bf16.mxu1 %v1724_v48  ;;  %1056 = vmatprep.subr.bf16.mxu0 %v1753_v2  ;;  %v1781_v48 = vld [vmem:[#allocation10 + $0x8] sm:$0xff]  }
  0xdb   : > { %806 = vmatpush1.bf16.msra.mxu1 %v1726_v49  ;;  %1057 = vmatpush1.bf16.msra.mxu0 %v1751_v3  ;;  %v1782_v49 = vld [vmem:[#allocation10 + $0x50] sm:$0xff]  }
  0xdc   : > { %807 = vmatprep.subr.bf16.mxu1 %v1727_v50  ;;  %1058 = vmatprep.subr.bf16.mxu0 %v1756_v4  ;;  %v1783_v50 = vld [vmem:[#allocation10 + $0x10] sm:$0xff]  }
  0xdf   : > { %808 = vmatpush1.bf16.msra.mxu1 %v1729_v51  ;;  %1059 = vmatpush1.bf16.msra.mxu0 %v1754_v5  ;;  %v1784_v51 = vld [vmem:[#allocation10 + $0x58] sm:$0xff]  }
  0xe0   : > { %1060 = vmatprep.subr.bf16.mxu0 %v1759_v6  ;;  %1542 = vmatprep.subr.bf16.mxu1 %v1778_v45 }
  0xe3   : > { %1061 = vmatpush1.bf16.msra.mxu0 %v1757_v7 }
  0xe4   : > { %1062 = vmatprep.subr.bf16.mxu0 %v1762_v8 }
  0xe7   : > { %1063 = vmatpush1.bf16.msra.mxu0 %v1760_v9 }
  0xe8   : > { %1064 = vmatprep.subr.bf16.mxu0 %v1765_v10 }
  0xeb   : > { %1065 = vmatpush1.bf16.msra.mxu0 %v1763_v11 }
  0xec   : > { %1066 = vmatprep.subr.bf16.mxu0 %v1768_v12  ;;  %v1788_v12 = vld [vmem:[#allocation10 + $0x68] sm:$0xff]  }
  0xef   : > { %1067 = vmatpush1.bf16.msra.mxu0 %v1766_v13  ;;  %v1789_v13 = vld [vmem:[#allocation10 + $0x28] sm:$0xff]  }
  0xf0   : > { %1068 = vmatprep.subr.bf16.mxu0 %v1771_v39 }
  0xf3   : > { %1069 = vmatpush1.bf16.msra.mxu0 %v1769_v40  ;;  %v1534_v40 = vld [vmem:[%s2404_s8] ss:$0 sm:$0xff] }
  0xf4   : > { %1070 = vmatprep.subr.bf16.mxu0 %v1774_v41 }
  0xf7   : > { %1071 = vmatpush1.bf16.msra.mxu0 %v1772_v42 }
  0xf8   : > { %1072 = vmatprep.subr.bf16.mxu0 %v1777_v43 }
  0xfb   : > { %1073 = vmatpush1.bf16.msra.mxu0 %v1775_v44 }
 0x191   : > { %v546_v21 = vpop.f32.mrb[0].mxu0 }
 0x192   : > { %v566_v22 = vadd.f32 %v559_v19, %v546_v21  ;;  %v548_v23 = vpop.f32.mrb[1].mxu0 }
 0x193   : > { %v567_v24 = vadd.f32 %v563_v20, %v548_v23  ;;  %v550_v25 = vpop.f32.mrb[2].mxu0 }
 0x194   : > { %v574_v26 = vmul.f32 0.01, %v566_v22  ;;  %v568_v27 = vadd.f32 %v559_v19, %v550_v25  ;;  %v552_v28 = vpop.f32.mrb[3].mxu0  ;;  %vm570_vm0 = vcmp.gt.f32.partialorder %v566_v22, 0.0  ;;  %v1793_v19 = vld [vmem:[#allocation10 + $0x38] sm:$0xff]  }
 0x195   : > { %v575_v29 = vmul.f32 0.01, %v567_v24  ;;  %v569_v30 = vadd.f32 %v563_v20, %v552_v28  ;;  %vm571_vm2 = vcmp.gt.f32.partialorder %v567_v24, 0.0  ;;  %v847_v20 = vld [vmem:[%s2402_s6] sm:$0x3] }
 0x196   : > { %vm572_vm1 = vcmp.gt.f32.partialorder %v568_v27, 0.0  ;;  %v576_v31 = vmul.f32 0.01, %v568_v27  ;;  %v578_v33 = vsel %vm570_vm0, %v566_v22, %v574_v26  ;;  %v1089_v21 = vrot.slane %v847_v20, %v2323_v16 }
 0x197   : > { %v577_v32 = vmul.f32 0.01, %v569_v30  ;;  %vm573_vm3 = vcmp.gt.f32.partialorder %v569_v30, 0.0  ;;  %v579_v35 = vsel %vm571_vm2, %v567_v24, %v575_v29  ;;  %v1093_v22 = vrot.slane %v847_v20, %v2328_v18 }
 0x198   : > { %v580_v34 = vsel %vm572_vm1, %v568_v27, %v576_v31 }
 0x199   : > { %v581_v36 = vsel %vm573_vm3, %v569_v30, %v577_v32  ;;  %v583_v37 = vpack.c.bf16 %v580_v34, %v578_v33 }
 0x19a   : > { %v584_v38 = vpack.c.bf16 %v581_v36, %v579_v35 }
 0x19c   : > { %809 = vmatprep.mubr.bf16.mxu1 %v584_v38 }
 0x19d   : > { %810 = vmatmul.mubr.bf16.vlgmr.msra.gmra.mrb[0].mxu1 %v583_v37 }
 0x19e   : > { %1543 = vmatpush3.bf16.msra.mxu1 %v1779_v46 }
 0x19f   : > { %1544 = vmatprep.subr.bf16.mxu1 %v1780_v47 }
 0x1a2   : > { %1545 = vmatpush3.bf16.msra.mxu1 %v1781_v48 }
 0x1a3   : > { %1546 = vmatprep.subr.bf16.mxu1 %v1782_v49 }
 0x1a6   : > { %1547 = vmatpush3.bf16.msra.mxu1 %v1783_v50 }
 0x1a7   : > { %1548 = vmatprep.subr.bf16.mxu1 %v1784_v51 }
 0x1aa   : > { %1549 = vmatpush3.bf16.msra.mxu1 %v1785_v52 }
 0x1ab   : > { %1550 = vmatprep.subr.bf16.mxu1 %v1786_v53 }
 0x1ae   : > { %1551 = vmatpush3.bf16.msra.mxu1 %v1787_v54 }
 0x1af   : > { %1552 = vmatprep.subr.bf16.mxu1 %v1788_v12 }
 0x1b2   : > { %1553 = vmatpush3.bf16.msra.mxu1 %v1789_v13 }
 0x1b3   : > { %1554 = vmatprep.subr.bf16.mxu1 %v1790_v14 }
 0x1b6   : > { %1555 = vmatpush3.bf16.msra.mxu1 %v1791_v15 }
 0x1b7   : > { %1556 = vmatprep.subr.bf16.mxu1 %v1792_v17 }
 0x1ba   : > { %1557 = vmatpush3.bf16.msra.mxu1 %v1793_v19 }
 0x270   : > { %v811_v58 = vpop.f32.mrb[0].mxu1 }
 0x271   : > { %v831_v59 = vadd.f32 %v824_v56, %v811_v58  ;;  %v813_v60 = vpop.f32.mrb[1].mxu1 }
 0x272   : > { %v832_v61 = vadd.f32 %v828_v57, %v813_v60  ;;  %v815_v62 = vpop.f32.mrb[2].mxu1 }
 0x273   : > { %v839_v63 = vmul.f32 0.01, %v831_v59  ;;  %v833_v0 = vadd.f32 %v824_v56, %v815_v62  ;;  %v817_v1 = vpop.f32.mrb[3].mxu1  ;;  %vm835_vm4 = vcmp.gt.f32.partialorder %v831_v59, 0.0 }
 0x274   : > { %v840_v2 = vmul.f32 0.01, %v832_v61  ;;  %v834_v3 = vadd.f32 %v828_v57, %v817_v1  ;;  %vm836_vm5 = vcmp.gt.f32.partialorder %v832_v61, 0.0 }
 0x275   : > { %vm837_vm6 = vcmp.gt.f32.partialorder %v833_v0, 0.0  ;;  %v841_v4 = vmul.f32 0.01, %v833_v0  ;;  %v843_v6 = vsel %vm835_vm4, %v831_v59, %v839_v63 }
 0x276   : > { %vm838_vm7 = vcmp.gt.f32.partialorder %v834_v3, 0.0  ;;  %v842_v5 = vmul.f32 0.01, %v834_v3  ;;  %v844_v9 = vsel %vm836_vm5, %v832_v61, %v840_v2 }
 0x277   : > { %v845_v7 = vsel %vm837_vm6, %v833_v0, %v841_v4 }
 0x278   : > { %v848_v8 = vpack.c.bf16 %v845_v7, %v843_v6  ;;  %v846_v10 = vsel %vm838_vm7, %v834_v3, %v842_v5 }
 0x279   : > { %v849_v11 = vpack.c.bf16 %v846_v10, %v844_v9 }
 0x27b   : > { %1074 = vmatprep.mubr.bf16.mxu0 %v849_v11 }
 0x27c   : > { %1075 = vmatmul.mubr.bf16.vlgmr.msra.gmra.mrb[4].mxu0 %v848_v8 }
 0x34f   : > { %v1076_v23 = vpop.f32.mrb[4].mxu0 }
 0x350   : > { %v1096_v24 = vadd.f32 %v1089_v21, %v1076_v23  ;;  %v1078_v25 = vpop.f32.mrb[5].mxu0 }
 0x351   : > { %v1097_v26 = vadd.f32 %v1093_v22, %v1078_v25  ;;  %v1080_v27 = vpop.f32.mrb[6].mxu0 }
 0x352   : > { %v1104_v28 = vmul.f32 0.01, %v1096_v24  ;;  %v1098_v29 = vadd.f32 %v1089_v21, %v1080_v27  ;;  %v1082_v30 = vpop.f32.mrb[7].mxu0  ;;  %vm1100_vm8 = vcmp.gt.f32.partialorder %v1096_v24, 0.0 }
 0x353   : > { %v1105_v31 = vmul.f32 0.01, %v1097_v26  ;;  %v1099_v32 = vadd.f32 %v1093_v22, %v1082_v30  ;;  %vm1101_vm9 = vcmp.gt.f32.partialorder %v1097_v26, 0.0 }
 0x354   : > { %vm1102_vm10 = vcmp.gt.f32.partialorder %v1098_v29, 0.0  ;;  %v1106_v33 = vmul.f32 0.01, %v1098_v29  ;;  %v1108_v35 = vsel %vm1100_vm8, %v1096_v24, %v1104_v28 }
 0x355   : > { %vm1103_vm11 = vcmp.gt.f32.partialorder %v1099_v32, 0.0  ;;  %v1107_v34 = vmul.f32 0.01, %v1099_v32  ;;  %v1109_v18 = vsel %vm1101_vm9, %v1097_v26, %v1105_v31 }
 0x356   : > { %v1110_v16 = vsel %vm1102_vm10, %v1098_v29, %v1106_v33 }
 0x357   : > { %v1113_v36 = vpack.c.bf16 %v1110_v16, %v1108_v35  ;;  %v1111_v37 = vsel %vm1103_vm11, %v1099_v32, %v1107_v34 }
 0x358   : > { %v1114_v38 = vpack.c.bf16 %v1111_v37, %v1109_v18 }
 0x35a   : > { %1275 = vmatprep.mubr.bf16.mxu1 %v1114_v38 }
 0x35b   : > { %1276 = vmatmul.mubr.bf16.vlgmr.msra.gmra.mrb[4].mxu1 %v1113_v36 }
 0x42e   : > { %v1558_v39 = vpop.f32.mrb[4].mxu1 }
 0x42f   : > { %v1559_v41 = vpop.f32.mrb[5].mxu1 }
 0x430   : > { %v1560_v42 = vadd.f32 %v1559_v41, %v1558_v39  ;;  %v1561_v43 = vpop.f32.mrb[6].mxu1 }
 0x431   : > { %v1562_v44 = vpop.f32.mrb[7].mxu1 }
 0x432   : > { %v1290_v45 = vadd.f32 %v1560_v42, %v1534_v40  ;;  %v1563_v46 = vadd.f32 %v1562_v44, %v1561_v43 }
 0x434   : > { %1794 = vtanh.f32 %v1290_v45  ;;  %v1291_v47 = vadd.f32 %v1563_v46, %v1534_v40 }
 0x436   : > { %1796 = vtanh.f32 %v1291_v47 }
 0x43e   : > { %v1795_v48 = vpop.eup %1794 }
 0x43f   : > { %1294 = vst [vmem:[%s408_s16] sm:$0xff] %v1795_v48 }
 0x440   : > { %v1797_v49 = vpop.eup %1796 }
 0x441   : > { %1295 = vst [vmem:[%s408_s16 + $0x8] sm:$0xff] %v1797_v49 }
 0x442   : > { %1953 = shalt.err (!%p1950_p12)
}
 0x443   : > { %s1954_s9 = scalar_lea.hbm %s2351_s17, 256  ;;  %s1958_s23 = scalar_lea.hbm %s2429_s15, 1024 }
 0x444   : > { %p1955_p9 = scmp.ne.s32.totalorder %s2351_s17, %s1954_s9  ;;  %p1959_p4 = scmp.lt.u32.totalorder %s2351_s17, %s2429_s15 }
 0x445   : > { %p1960_p8 = scmp.lt.u32.totalorder %s1958_s23, %s1954_s9  ;;  %p1962_p0 = scmp.lt.u32.totalorder %s1954_s9, %s2351_s17 }
 0x446   : > { %p1956_p13 = pnand %p1955_p9, %p2249_p3 }
 0x447   : > { %p1961_p6 = por %p1960_p8, %p1959_p4 }
 0x448   : > { %p1957_p10 = pneg %p1956_p13 }
 0x449   : > { %p1963_p5 = por %p1962_p0, %p1961_p6 }
 0x44b   : > { %p1964_p7 = pnand %p1963_p5, %p1957_p10 }
 0x44d   : > { %1967 = shalt.err (!%p1964_p7)
}
 0x44e   : > { %s2027_s30 = smov 128   ;;  %s2028_s26 = smov 8  }
 0x44f   : > { %1582 = dma.vmem_to_hbm [thread:$0]  (%p2249_p3), %s2353_s24, 256, %s2351_s17, %s1297_s25, %s2027_s30, %s2027_s30, %s2028_s26  }
 0x450 PF: > { %s2430_s13 = sld [smem:[#allocation16_spill]]  ;;  %s2431_s19 = sld [smem:[#allocation17_spill]] }
 0x451   : > { %p1614_p11 = scmp.ge.s32.totalorder %s2014_s12, 2 }
 0x456   : > { %s1325_s22 = sand.u32 1, %s2430_s13   ;;  %p2432_p1 = scmp.ne.s32.totalorder %s2431_s19, 0 }
 0x457   : > { %s1326_s9 = scalar_lea.sflag [#allocation4], %s1325_s22 }
 0x458   : > { %p1602_p2 = pnand %p1614_p11, %p2432_p1 }
 0x45a   : > { %1997 = dma.done.wait (!%p1602_p2), %s1326_s9, 256  }
 0x45b   : > { %1999 = vsyncadd (!%p1602_p2), %s1326_s9, 4294967040  ;;  %p24_p12 = scmp.ge.s32.totalorder %s2236_s27, 6   ;;  %s2433_s30 = smov %s2006_s10 }
 0x45c   : > { %s2434_s10 = smov %s2010_s11  ;;  %s2435_s11 = smov %s2245_s18 }
 0x45d   : > { %s2436_s12 = smov %s2236_s27  ;;  %26 = sbr.rel (!%p24_p12) target bundleno = 9 (0x9), region = 117 }
 0x464   :  { %1331 = vsyncpa [#allocation3], 1 }
 0x465   :  { %1333 = vsyncpa [#allocation3 + $0x1], 1 }
 0x466   :  { %1334 = vsyncpa [#allocation6], 1 }
 0x467   :  { %1335 = vsyncpa [#allocation9], 1 }
 0x468   :  { %1336 = vsyncpa [#allocation4], 1 }
 0x469   :  { %1338 = vsyncpa [#allocation4 + $0x1], 1 }

</bundles_post_ra>
